<compile_context>
chip_gen: v7x
topology: tpu7x:2x2x1
jax: 0.10.0
libtpu: 0.0.40
codegen_flags: <defaults>
</compile_context>

<pallas_src>
import functools

import jax
import jax.numpy as jnp
from jax.experimental import pallas as pl
from jax.experimental.pallas import tpu as pltpu


# ----------------------------------------------------------------------------
# helpers
# ----------------------------------------------------------------------------
def _round_up(x, m):
    return ((x + m - 1) // m) * m


def _pick_tile(dim, preferred, quantum):
    """Largest tile <= preferred that divides dim and is a multiple of
    `quantum`; falls back to the full dim (full-extent blocks are always
    legal)."""
    if dim <= preferred:
        return dim
    t = (preferred // quantum) * quantum
    while t >= quantum:
        if dim % t == 0:
            return t
        t -= quantum
    return dim


# ----------------------------------------------------------------------------
# Kernel 1: tiled matmul (f32 A tile cast to bf16 in VMEM, bf16 B, f32 acc,
#           bf16 store).  onehot @ word_embeddings.
# ----------------------------------------------------------------------------
def _matmul_kernel(a_ref, b_ref, o_ref, acc_ref):
    @pl.when(pl.program_id(2) == 0)
    def _():
        acc_ref[...] = jnp.zeros_like(acc_ref)

    # A arrives as f32 (no wrapper pre-cast => no extra HBM-sized temporary);
    # cast to bf16 in VMEM for the MXU.  B is pre-cast once (it is re-streamed
    # M/tm times).
    acc_ref[...] += jnp.dot(
        a_ref[...].astype(jnp.bfloat16), b_ref[...],
        preferred_element_type=jnp.float32,
    )

    @pl.when(pl.program_id(2) == pl.num_programs(2) - 1)
    def _():
        o_ref[...] = acc_ref[...].astype(o_ref.dtype)


def pallas_matmul_to_bf16(a_f32, b_bf16, *, tm_pref=1024, tk_pref=512,
                          tn_pref=512):
    """a_f32: (M, K) f32, b_bf16: (K, N) bf16 -> (M, N) bf16 (f32 accumulation).

    Large tm minimizes how often the (K, N) table is re-streamed from HBM.
    Dims are padded to tile multiples (no huge full-extent fallback blocks)."""
    M, K = a_f32.shape
    K2, N = b_bf16.shape
    assert K == K2

    tm = min(tm_pref, _round_up(M, 16))   # 16: bf16 output sublane packing
    tk = min(tk_pref, _round_up(K, 128))
    tn = min(tn_pref, _round_up(N, 128))
    Mp, Kp, Np = _round_up(M, tm), _round_up(K, tk), _round_up(N, tn)
    if (Mp, Kp) != (M, K):
        a_f32 = jnp.pad(a_f32, ((0, Mp - M), (0, Kp - K)))
    if (Kp, Np) != (K, N):
        b_bf16 = jnp.pad(b_bf16, ((0, Kp - K), (0, Np - N)))

    # VMEM estimate (double-buffered in/out blocks + f32 accumulator); tile
    # caps keep this ~9 MiB, comfortably under the v7x 64 MiB physical VMEM.
    est = 2 * (tm * tk * 4 + tk * tn * 2 + tm * tn * 2) + tm * tn * 4
    vmem_limit = int(min(max(2 * est, 32 * 1024 * 1024), 48 * 1024 * 1024))

    grid = (Mp // tm, Np // tn, Kp // tk)
    out = pl.pallas_call(
        _matmul_kernel,
        out_shape=jax.ShapeDtypeStruct((Mp, Np), jnp.bfloat16),
        grid_spec=pltpu.PrefetchScalarGridSpec(
            num_scalar_prefetch=0,
            grid=grid,
            in_specs=[
                pl.BlockSpec((tm, tk), lambda i, j, k: (i, k)),
                pl.BlockSpec((tk, tn), lambda i, j, k: (k, j)),
            ],
            out_specs=pl.BlockSpec((tm, tn), lambda i, j, k: (i, j)),
            scratch_shapes=[pltpu.VMEM((tm, tn), jnp.float32)],
        ),
        compiler_params=pltpu.CompilerParams(
            dimension_semantics=("parallel", "parallel", "arbitrary"),
            vmem_limit_bytes=vmem_limit,
        ),
    )(a_f32, b_bf16)
    return out[:M, :N]


# ----------------------------------------------------------------------------
# Kernel 2: batched embedding row gather (manual DMA, R rows per grid step)
#   ids in SMEM (scalar prefetch) drive R row DMAs from the HBM table into an
#   f32 VMEM scratch; one lane-dense (R, H) bf16 store per step.
# ----------------------------------------------------------------------------
def _gather_rows_kernel(ids_ref, table_hbm, o_ref, buf_ref, sem,
                        *, rows_per_step):
    base = pl.program_id(0) * rows_per_step
    for r in range(rows_per_step):
        pltpu.make_async_copy(
            table_hbm.at[ids_ref[base + r]], buf_ref.at[r], sem.at[r]
        ).start()
    for r in range(rows_per_step):
        pltpu.make_async_copy(
            table_hbm.at[ids_ref[base + r]], buf_ref.at[r], sem.at[r]
        ).wait()
    o_ref[...] = buf_ref[...].astype(o_ref.dtype)


def embedding_gather(ids_flat, table_f32, *, rows_per_step=16):
    """ids_flat: (N,) int, table_f32: (V, H) f32 -> (N, H) bf16."""
    V, H = table_f32.shape
    n = ids_flat.shape[0]
    R = min(rows_per_step, n)
    n_pad = _round_up(n, R)
    ids = jnp.clip(ids_flat.astype(jnp.int32), 0, V - 1)   # guard bad token ids
    if n_pad != n:
        ids = jnp.pad(ids, (0, n_pad - n))

    kernel = functools.partial(_gather_rows_kernel, rows_per_step=R)
    out = pl.pallas_call(
        kernel,
        out_shape=jax.ShapeDtypeStruct((n_pad, H), jnp.bfloat16),
        grid_spec=pltpu.PrefetchScalarGridSpec(
            num_scalar_prefetch=1,                       # ids -> SMEM
            grid=(n_pad // R,),
            in_specs=[pl.BlockSpec(memory_space=pl.ANY)],  # table stays in HBM
            out_specs=pl.BlockSpec((R, H), lambda i, ids: (i, 0)),
            scratch_shapes=[
                pltpu.VMEM((R, H), jnp.float32),         # gathered rows
                pltpu.SemaphoreType.DMA((R,)),
            ],
        ),
        compiler_params=pltpu.CompilerParams(
            dimension_semantics=("parallel",),
        ),
    )(ids, table_f32)
    return out[:n]


# ----------------------------------------------------------------------------
# Kernel 3: fused uq_model stand-in (masked mean-pool over S + linear head)
#   Grid = (B/bb, S/ts).  The mask is pre-normalized by 1/count on the host,
#   so the kernel is a pure masked-sum (MXU) + classifier on the last S step.
#   Class dim padded to 128 for a lane-dense store.
# ----------------------------------------------------------------------------
def _pool_classify_kernel(emb_ref, mask_ref, w_ref, o_ref, acc_ref):
    s = pl.program_id(1)

    @pl.when(s == 0)
    def _():
        acc_ref[...] = jnp.zeros_like(acc_ref)

    m = mask_ref[...]                                   # (bb, 1, ts) f32, pre-normalized
    e = emb_ref[...].astype(jnp.float32)                # (bb, ts, H)  bf16 -> f32 in VMEM
    acc_ref[...] += jnp.einsum(
        "bos,bsh->boh", m, e, preferred_element_type=jnp.float32
    )

    @pl.when(s == pl.num_programs(1) - 1)
    def _():
        logits = jnp.einsum(
            "boh,hc->boc", acc_ref[...], w_ref[...],
            preferred_element_type=jnp.float32,
        )
        o_ref[...] = logits                             # (bb, 1, Cp) lane-dense


def uq_model_stub(inputs_embeds, attention_mask, w_cls):
    """inputs_embeds: (B, S, H) bf16/f32, attention_mask: (B, S), w_cls: (H, C)
    -> logits (B, C) f32.  Deterministic stand-in for the Longformer."""
    B, S, H = inputs_embeds.shape
    C = w_cls.shape[1]
    Cp = _round_up(C, 128)
    w_pad = jnp.pad(w_cls.astype(jnp.float32), ((0, 0), (0, Cp - C)))

    # Host-side mask normalization (tiny (B,S) op): masked mean == masked sum
    # with mask/count -> no count accumulator / reciprocal inside the kernel.
    am = attention_mask.astype(jnp.float32)
    counts = jnp.maximum(jnp.sum(am, axis=1, keepdims=True), 1.0)
    norm_mask = (am / counts).reshape(B, 1, S)

    # Keep >=2 blocks on the parallel (batch) axis so v7x's 2 TCs both work.
    bb_pref = 8 if B >= 16 else max(1, B // 2)
    bb = _pick_tile(B, bb_pref, 1)
    ts = _pick_tile(S, 512, 128)                        # S tile (mask lane dim)
    grid = (B // bb, S // ts)

    out = pl.pallas_call(
        _pool_classify_kernel,
        out_shape=jax.ShapeDtypeStruct((B, 1, Cp), jnp.float32),
        grid_spec=pltpu.PrefetchScalarGridSpec(
            num_scalar_prefetch=0,
            grid=grid,
            in_specs=[
                pl.BlockSpec((bb, ts, H), lambda b, s: (b, s, 0)),
                pl.BlockSpec((bb, 1, ts), lambda b, s: (b, 0, s)),
                pl.BlockSpec((H, Cp), lambda b, s: (0, 0)),
            ],
            out_specs=pl.BlockSpec((bb, 1, Cp), lambda b, s: (b, 0, 0)),
            scratch_shapes=[
                pltpu.VMEM((bb, 1, H), jnp.float32),    # masked-sum accumulator
            ],
        ),
        compiler_params=pltpu.CompilerParams(
            dimension_semantics=("parallel", "arbitrary"),
        ),
    )(inputs_embeds, norm_mask, w_pad)
    return out.reshape(B, Cp)[:, :C]


# ----------------------------------------------------------------------------
# QGSumm forward (Pallas-backed)
# ----------------------------------------------------------------------------
def qgsumm_forward(
    summary_ids,        # (B, S_ids) int32   -- stand-in for generate() output ids
    summary_onehot,     # (B, S_sum, V) f32  -- stand-in for generate() one-hots
    input_ids,          # (B, S_in) int32    -- model_inputs['input_ids']
    attention_mask,     # (B, S_in) f32      -- model_inputs['attention_mask']
    word_embeddings,    # (V, H) f32         -- uq_model word embeddings
    w_cls,              # (H, C) f32         -- uq_model stand-in classifier weight
    lambda1,            # python float
):
    B, S_ids = summary_ids.shape
    _, S_sum, V = summary_onehot.shape
    H = word_embeddings.shape[1]
    S_in = input_ids.shape[1]

    # summary_attention_mask = (summary_ids != 1).float()  -- tiny, plain XLA.
    summary_attention_mask = (summary_ids != 1).astype(jnp.float32)

    # Pre-cast the embedding table to bf16 once (it is re-streamed by the
    # matmul grid); summary_onehot itself stays f32 and is cast per-tile in
    # the kernel.
    word_embeddings_bf16 = word_embeddings.astype(jnp.bfloat16)

    # summary_emd = summary_onehot @ word_embeddings   -> (B, S_sum, H) bf16
    summary_emd = pallas_matmul_to_bf16(
        summary_onehot.reshape(B * S_sum, V), word_embeddings_bf16
    ).reshape(B, S_sum, H)

    if summary_emd.shape[1] >= summary_attention_mask.shape[1]:
        raise ValueError(
            "The length of sum_emb should be less than the length of sum_atten_mask"
        )

    summary_attention_mask = summary_attention_mask[:, S_ids - S_sum:]

    # global_attention_mask (constructed for parity; unused by the stub uq model)
    global_attention_mask = jnp.zeros((B, S_sum), jnp.float32).at[:, 0].set(1.0)
    del global_attention_mask  # TODO(synk): consumed only by the real Longformer.

    # prediction = uq_model(inputs_embeds=summary_emd, attention_mask=...)
    prediction = uq_model_stub(summary_emd, summary_attention_mask, w_cls)  # (B, C)

    # target = uq_model(input_ids, attention_mask): Pallas batched row gather.
    input_embeds = embedding_gather(
        input_ids.reshape(-1), word_embeddings
    ).reshape(B, S_in, H)                                                   # bf16
    target = uq_model_stub(input_embeds, attention_mask, w_cls)            # (B, C)

    # kl_loss = CrossEntropyLoss()(prediction, target)  (soft targets; target is
    # raw logits — faithful to the original PyTorch).  Tiny -> plain XLA.
    logp = jax.nn.log_softmax(prediction, axis=-1)
    kl_loss = jnp.mean(-jnp.sum(target * logp, axis=-1))

    # loss = mean(kl_loss * (1 + exp((sum(sam)-B)/(sum(am)-B) - 0.5) * lambda1))
    ratio = (jnp.sum(summary_attention_mask) - summary_attention_mask.shape[0]) / (
        jnp.sum(attention_mask) - attention_mask.shape[0]
    )
    loss = jnp.mean(kl_loss * (1.0 + jnp.exp(ratio - 0.5) * lambda1))

    # "summary" would be bart_tokenizer.decode(summary_ids); return ids instead.
    return loss, summary_ids


# ----------------------------------------------------------------------------
# Demo
# ----------------------------------------------------------------------------
if __name__ == "__main__":
    B, S_ids, S_sum, S_in = 2, 16, 8, 16
    V, H, C = 128, 128, 8
    lambda1 = 0.3

    key = jax.random.PRNGKey(0)
    k_emb, k_cls, k_sid, k_soh, k_iid = jax.random.split(key, 5)

    # Deterministic synthetic parameters (module __init__ holds real models).
    word_embeddings = 0.02 * jax.random.normal(k_emb, (V, H), jnp.float32)
    w_cls = 0.05 * jax.random.normal(k_cls, (H, C), jnp.float32)

    # Synthetic "generation" outputs and model inputs.
    summary_ids = jax.random.randint(k_sid, (B, S_ids), 0, V, dtype=jnp.int32)
    summary_ids = summary_ids.at[:, -2:].set(1)  # some pad(=1) tokens
    summary_tok = jax.random.randint(k_soh, (B, S_sum), 0, V, dtype=jnp.int32)
    summary_onehot = jax.nn.one_hot(summary_tok, V, dtype=jnp.float32)

    input_ids = jax.random.randint(k_iid, (B, S_in), 0, V, dtype=jnp.int32)
    attention_mask = jnp.ones((B, S_in), jnp.float32).at[1, 12:].set(0.0)

    loss, summary = qgsumm_forward(
        summary_ids, summary_onehot, input_ids, attention_mask,
        word_embeddings, w_cls, lambda1,
    )
    jax.block_until_ready(loss)
    jax.block_until_ready(summary)
    assert loss.shape == () and jnp.isfinite(loss)
    print("KERNEL_OK")
</pallas_src>

<mosaic_0001>
module attributes {stable_mosaic.version = 11 : i64} {
  func.func @_matmul_kernel(%arg0: i32, %arg1: i32, %arg2: i32, %arg3: memref<16x128xf32, #tpu.memory_space<vmem>>, %arg4: memref<128x128xbf16, #tpu.memory_space<vmem>>, %arg5: memref<16x128xbf16, #tpu.memory_space<vmem>>, %arg6: memref<16x128xf32, #tpu.memory_space<vmem>>) attributes {dimension_semantics = [#tpu.dimension_semantics<parallel>, #tpu.dimension_semantics<parallel>, #tpu.dimension_semantics<arbitrary>], iteration_bounds = array<i64: 1, 1, 1>, scalar_prefetch = 0 : i64, scratch_operands = 1 : i64, tpu.core_type = #tpu.core_type<tc>, window_params = [{transform_indices = @transform_0, window_bounds = array<i64: 16, 128>}, {transform_indices = @transform_1, window_bounds = array<i64: 128, 128>}, {transform_indices = @transform_2, window_bounds = array<i64: 16, 128>}]} {
    %c0_i32 = arith.constant 0 : i32
    %0 = arith.cmpi eq, %arg2, %c0_i32 : i32
    %1 = arith.extui %0 : i1 to i32
    %c0_i32_0 = arith.constant 0 : i32
    %2 = arith.cmpi ne, %1, %c0_i32_0 : i32
    scf.if %2 {
      %cst_10 = arith.constant 0.000000e+00 : f32
      %13 = vector.broadcast %cst_10 : f32 to vector<16x128xf32>
      %c0_11 = arith.constant 0 : index
      %c0_12 = arith.constant 0 : index
      %14 = vector.load %arg6[%c0_11, %c0_12] : memref<16x128xf32, #tpu.memory_space<vmem>>, vector<16x128xf32>
      tpu.vector_store %arg6[%c0_11, %c0_12], %13 {strides = array<i32>} : memref<16x128xf32, #tpu.memory_space<vmem>>, vector<16x128xf32>,
    } else {
    }
    %c0 = arith.constant 0 : index
    %c0_1 = arith.constant 0 : index
    %3 = vector.load %arg6[%c0, %c0_1] : memref<16x128xf32, #tpu.memory_space<vmem>>, vector<16x128xf32>
    %c0_2 = arith.constant 0 : index
    %c0_3 = arith.constant 0 : index
    %4 = vector.load %arg3[%c0_2, %c0_3] : memref<16x128xf32, #tpu.memory_space<vmem>>, vector<16x128xf32>
    %5 = arith.truncf %4 : vector<16x128xf32> to vector<16x128xbf16>
    %c0_4 = arith.constant 0 : index
    %c0_5 = arith.constant 0 : index
    %6 = vector.load %arg4[%c0_4, %c0_5] : memref<128x128xbf16, #tpu.memory_space<vmem>>, vector<128x128xbf16>
    %cst = arith.constant dense<0.000000e+00> : vector<16x128xf32>
    %7 = tpu.matmul %5, %6, %cst {dimension_numbers = #tpu.dot_dimension_numbers<[1], [0], [0], [1], [0, 0, 1, 1], [], []>} : vector<16x128xbf16>, vector<128x128xbf16>, vector<16x128xf32> -> vector<16x128xf32>
    %8 = arith.addf %3, %7 : vector<16x128xf32>
    %c0_6 = arith.constant 0 : index
    %c0_7 = arith.constant 0 : index
    %9 = vector.load %arg6[%c0_6, %c0_7] : memref<16x128xf32, #tpu.memory_space<vmem>>, vector<16x128xf32>
    tpu.vector_store %arg6[%c0_6, %c0_7], %8 {strides = array<i32>} : memref<16x128xf32, #tpu.memory_space<vmem>>, vector<16x128xf32>,
    %c0_i32_8 = arith.constant 0 : i32
    %10 = arith.cmpi eq, %arg2, %c0_i32_8 : i32
    %11 = arith.extui %10 : i1 to i32
    %c0_i32_9 = arith.constant 0 : i32
    %12 = arith.cmpi ne, %11, %c0_i32_9 : i32
    scf.if %12 {
      %c0_10 = arith.constant 0 : index
      %c0_11 = arith.constant 0 : index
      %13 = vector.load %arg6[%c0_10, %c0_11] : memref<16x128xf32, #tpu.memory_space<vmem>>, vector<16x128xf32>
      %14 = arith.truncf %13 : vector<16x128xf32> to vector<16x128xbf16>
      %c0_12 = arith.constant 0 : index
      %c0_13 = arith.constant 0 : index
      %15 = vector.load %arg5[%c0_12, %c0_13] : memref<16x128xbf16, #tpu.memory_space<vmem>>, vector<16x128xbf16>
      tpu.vector_store %arg5[%c0_12, %c0_13], %14 {strides = array<i32>} : memref<16x128xbf16, #tpu.memory_space<vmem>>, vector<16x128xbf16>,
    } else {
    }
    return
  }
  func.func @transform_0(%arg0: i32, %arg1: i32, %arg2: i32) -> (i32, i32) {
    %c0_i32 = arith.constant 0 : i32
    return %arg0, %arg2 : i32, i32
  }
  func.func @transform_1(%arg0: i32, %arg1: i32, %arg2: i32) -> (i32, i32) {
    %c0_i32 = arith.constant 0 : i32
    return %arg2, %arg1 : i32, i32
  }
  func.func @transform_2(%arg0: i32, %arg1: i32, %arg2: i32) -> (i32, i32) {
    %c0_i32 = arith.constant 0 : i32
    return %arg0, %arg1 : i32, i32
  }
}

</mosaic_0001>

<bundles_post_ra>
// kernel: tpu_custom_call.1
= control target key start
LH: loop header
LB: loop body
LE: loop exit
PB: predicated region body
PF: predicated region fallthrough
CT: control target
= control target key end

     0   :  { %7 = vsyncpa [#allocation4], 0  ;;  %s395_s0 = inlined_call_operand.hbm [shape: f32[16,128], index: 0, kind: input, shape index: {}]   ;;  %s396_s1 = inlined_call_operand.hbm [shape: bf16[128,128], index: 1, kind: input, shape index: {}]   ;;  %s397_s2 = inlined_call_operand.hbm [shape: bf16[16,128], index: 2, kind: output, shape index: {}]  }
   0x1   :  { %8 = vsyncpa [#allocation7], 0 }
   0x2   :  { %9 = vsyncpa [#allocation5], 0  ;;  %s329_s9 = smov [#allocation3]   ;;  %s257_s13 = scalar_lea.hbm %s395_s0, 256 }
   0x3   :  { %s15_s10 = sshll.u32 %s329_s9, 4  ;;  %p258_p0 = scmp.ne.s32.totalorder %s395_s0, %s257_s13  ;;  %s16_s10 = int_to_ptr.vmem [resolvable:$true] %s15_s10 }
   0x4   :  { %p261_p1 = scmp.lt.u32.totalorder %s257_s13, %s395_s0 }
   0x6   :  { %p263_p2 = pnand %p261_p1, %p258_p0 }
   0x8   :  { %266 = shalt.err (!%p263_p2)
}
   0x9   :  { %s267_s18 = scalar_lea.vmem %s16_s10, 256  ;;  %p272_p4 = scmp.lt.s32.totalorder %s16_s10, %s16_s10 }
   0xa   :  { %p268_p3 = scmp.ne.s32.totalorder %s16_s10, %s267_s18  ;;  %p273_p5 = scmp.lt.s32.totalorder %s267_s18, %s267_s18 }
   0xc   :  { %p274_p6 = por %p273_p5, %p272_p4 }
   0xe   :  { %p275_p7 = pnand %p274_p6, %p268_p3 }
  0x10   :  { %278 = shalt.err (!%p275_p7)
}
  0x11   :  { %s330_s19 = smov 128   ;;  %s331_s20 = smov 8  }
  0x12   :  { %21 = dma.hbm_to_vmem [thread:$0]  %s395_s0, 256, %s16_s10, [#allocation4], %s330_s19, %s330_s19, %s331_s20  }
  0x13   :  { %s332_s23 = smov [#allocation6]   ;;  %s279_s27 = scalar_lea.hbm %s396_s1, 1024 }
  0x14   :  { %s27_s24 = sshll.u32 %s332_s23, 4  ;;  %p280_p8 = scmp.ne.s32.totalorder %s396_s1, %s279_s27  ;;  %s28_s24 = int_to_ptr.vmem [resolvable:$true] %s27_s24 }
  0x15   :  { %p283_p9 = scmp.lt.u32.totalorder %s279_s27, %s396_s1 }
  0x17   :  { %p285_p10 = pnand %p283_p9, %p280_p8 }
  0x19   :  { %288 = shalt.err (!%p285_p10)
}
  0x1a   :  { %s289_s4 = scalar_lea.vmem %s28_s24, 1024  ;;  %p294_p12 = scmp.lt.s32.totalorder %s28_s24, %s28_s24 }
  0x1b   :  { %p290_p11 = scmp.ne.s32.totalorder %s28_s24, %s289_s4  ;;  %p295_p13 = scmp.lt.s32.totalorder %s289_s4, %s289_s4 }
  0x1d   :  { %p296_p0 = por %p295_p13, %p294_p12 }
  0x1f   :  { %p297_p1 = pnand %p296_p0, %p290_p11 }
  0x21   :  { %300 = shalt.err (!%p297_p1)
}
  0x22   :  { %s333_s0 = smov 64   ;;  %s334_s5 = smov 4  }
  0x23   :  { %33 = dma.hbm_to_vmem [thread:$0]  %s396_s1, 1024, %s28_s24, [#allocation7], %s333_s0, %s333_s0, %s334_s5  }
  0x24   :  { %323 = dma.done.wait [#allocation4], 256  }
  0x25   :  { %324 = vsyncadd [#allocation4], 4294967040 }
  0x26   :  { %325 = dma.done.wait [#allocation7], 1024  }
  0x27   :  { %326 = vsyncadd [#allocation7], 4294966272  ;;  %v335_v0 = vmov 0.0   ;;  %vm336_vm0 = vmmov 0   ;;  %v249_v1 = vld [vmem:[#allocation6] sm:$0xff]   ;;  %v250_v2 = vld [vmem:[#allocation6 + $0x8] sm:$0xff]  }
  0x28   :  { %220 = vmatprep.subr.bf16.mxu0 %v335_v0  ;;  %236 = vmatprep.mubr.msk.bf16.mxu0 %vm336_vm0, %v335_v0  ;;  %v251_v3 = vld [vmem:[#allocation6 + $0x10] sm:$0xff]   ;;  %v252_v4 = vld [vmem:[#allocation6 + $0x18] sm:$0xff]   ;;  %v253_v5 = vld [vmem:[#allocation6 + $0x20] sm:$0xff]   ;;  %s337_s1 = smov [#allocation8]  }
  0x29   :  { %221 = vmatpush3.bf16.msra.mxu0 %v249_v1  ;;  %v254_v6 = vld [vmem:[#allocation6 + $0x28] sm:$0xff]   ;;  %v255_v7 = vld [vmem:[#allocation6 + $0x30] sm:$0xff]   ;;  %v256_v8 = vld [vmem:[#allocation6 + $0x38] sm:$0xff]   ;;  %s181_s8 = sshll.u32 %s337_s1, 4  ;;  %s182_s8 = int_to_ptr.vmem [resolvable:$true] %s181_s8 }
  0x2a   :  { %222 = vmatprep.subr.bf16.mxu0 %v335_v0  ;;  %v49_v9 = vld [vmem:[#allocation3] sm:$0xff]  ;;  %v50_v10 = vld [vmem:[#allocation3 + $0x8] sm:$0xff]  ;;  %s301_s9 = scalar_lea.vmem %s182_s8, 128  ;;  %p306_p3 = scmp.lt.s32.totalorder %s182_s8, %s182_s8 }
  0x2b   :  { %v51_v11 = vpack.c.bf16 %v50_v10, %v49_v9  ;;  %p302_p2 = scmp.ne.s32.totalorder %s182_s8, %s301_s9  ;;  %p307_p4 = scmp.lt.s32.totalorder %s301_s9, %s301_s9 }
  0x2d   :  { %223 = vmatpush3.bf16.msra.mxu0 %v250_v2  ;;  %p308_p5 = por %p307_p4, %p306_p3 }
  0x2e   :  { %224 = vmatprep.subr.bf16.mxu0 %v335_v0 }
  0x2f   :  { %p309_p6 = pnand %p308_p5, %p302_p2 }
  0x31   :  { %225 = vmatpush3.bf16.msra.mxu0 %v251_v3 }
  0x32   :  { %226 = vmatprep.subr.bf16.mxu0 %v335_v0 }
  0x35   :  { %227 = vmatpush3.bf16.msra.mxu0 %v252_v4 }
  0x36   :  { %228 = vmatprep.subr.bf16.mxu0 %v335_v0 }
  0x39   :  { %229 = vmatpush3.bf16.msra.mxu0 %v253_v5 }
  0x3a   :  { %230 = vmatprep.subr.bf16.mxu0 %v335_v0 }
  0x3d   :  { %231 = vmatpush3.bf16.msra.mxu0 %v254_v6 }
  0x3e   :  { %232 = vmatprep.subr.bf16.mxu0 %v335_v0 }
  0x41   :  { %233 = vmatpush3.bf16.msra.mxu0 %v255_v7 }
  0x42   :  { %234 = vmatprep.subr.bf16.mxu0 %v335_v0 }
  0x45   :  { %235 = vmatpush3.bf16.msra.mxu0 %v256_v8 }
  0x48   :  { %237 = vmatmul.mubr.bf16.vlgmr.msra.gmra.mrb[0].mxu0 %v51_v11 }
 0x11b   :  { %v150_v12 = vpop.f32.mrb[0].mxu0 }
 0x11c   :  { %v238_v13 = vpop.f32.mrb[1].mxu0 }
 0x11d   :  { %v153_v14 = vpop.f32.mrb[2].mxu0 }
 0x11e   :  { %v209_v15 = vpack.c.bf16 %v153_v14, %v150_v12  ;;  %v239_v16 = vpop.f32.mrb[3].mxu0 }
 0x120   :  { %210 = vst [vmem:[#allocation8] sm:$0xff] %v209_v15  }
 0x121   :  { %312 = shalt.err (!%p309_p6)
}
 0x122   :  { %s313_s12 = scalar_lea.hbm %s397_s2, 128 }
 0x123   :  { %p314_p7 = scmp.ne.s32.totalorder %s397_s2, %s313_s12  ;;  %p317_p8 = scmp.lt.u32.totalorder %s313_s12, %s397_s2 }
 0x125   :  { %p319_p9 = pnand %p317_p8, %p314_p7 }
 0x127   :  { %322 = shalt.err (!%p319_p9)
}
 0x128   :  { %187 = dma.vmem_to_hbm [thread:$0]  %s182_s8, 128, %s397_s2, [#allocation5], %s333_s0, %s333_s0, %s334_s5  }
 0x129   :  { %327 = dma.done.wait [#allocation5], 128  }
 0x12a   :  { %328 = vsyncadd [#allocation5], 4294967168 }
 0x12b   :  { %191 = vsyncpa [#allocation4], 1 }
 0x12c   :  { %192 = vsyncpa [#allocation7], 1 }
 0x12d   :  { %193 = vsyncpa [#allocation5], 1 }

</bundles_post_ra>
